<compile_context>
chip_gen: v7x
topology: tpu7x:2x2x1
jax: 0.10.0
libtpu: 0.0.40
codegen_flags: <defaults>
</compile_context>

<pallas_src>
import functools
import math

import jax
import jax.numpy as jnp
from jax.experimental import pallas as pl
from jax.experimental.pallas import tpu as pltpu


def _gelu_exact(x):
    # PyTorch nn.GELU() default is the exact erf-based GELU.
    return 0.5 * x * (1.0 + jax.lax.erf(x * (1.0 / math.sqrt(2.0))))


def _round_up(n, m):
    return ((n + m - 1) // m) * m


def _pick_tile(dim, preferred):
    """Largest tile <= preferred that divides `dim` and is a multiple of 8
    (or the full dim itself, which is always a legal block)."""
    if dim <= preferred:
        return dim
    t = preferred - (preferred % 8)
    while t >= 8:
        if dim % t == 0:
            return t
        t -= 8
    return dim


def _pick_chunk(dim, preferred):
    """Largest lane-aligned (multiple of 128) chunk <= preferred dividing `dim`."""
    if dim <= preferred:
        return dim
    c = preferred - (preferred % 128)
    while c >= 128:
        if dim % c == 0:
            return c
        c -= 128
    return dim


def _nbytes(a):
    return int(a.size) * int(jnp.dtype(a.dtype).itemsize)


@functools.lru_cache(maxsize=None)
def _vmem_cap_bytes():
    """Per-generation VMEM cap with headroom for Mosaic internal scratch."""
    try:
        cap = int(pltpu.get_tpu_info().vmem_capacity_bytes)
    except Exception:
        cap = 64 * 1024 * 1024  # conservative fallback (v7x per-TC)
    # 64 MiB chips -> 56 MiB cap; 128 MiB chips -> 112 MiB cap.
    return max(32 * 1024 * 1024, min(cap - 8 * 1024 * 1024, (cap * 7) // 8))


def _vmem_limit(dbl_bytes=(), single_bytes=(), scratch_bytes=0):
    est = 2 * int(sum(dbl_bytes)) + int(sum(single_bytes)) + int(scratch_bytes)
    est = int(est * 1.3) + (8 << 20)  # headroom for compiler-internal scratch
    return int(min(max(est, 32 << 20), _vmem_cap_bytes()))


@functools.lru_cache(maxsize=None)
def _buffered_weights_supported():
    """Probe once whether pipeline_mode=pl.Buffered(1) (single-buffered resident
    weights) is supported; fall back to default double-buffering otherwise."""
    try:
        def _probe(x_ref, o_ref):
            o_ref[...] = x_ref[...] + 1.0

        x = jnp.zeros((8, 128), jnp.float32)
        out = pl.pallas_call(
            _probe,
            grid=(1,),
            in_specs=[pl.BlockSpec((8, 128), lambda i: (0, 0),
                                   pipeline_mode=pl.Buffered(1))],
            out_specs=pl.BlockSpec((8, 128), lambda i: (0, 0)),
            out_shape=jax.ShapeDtypeStruct((8, 128), jnp.float32),
        )(x)
        jax.block_until_ready(out)
        return True
    except Exception:
        return False


def _weight_spec(shape, index_map):
    """BlockSpec for a constant-index (VMEM-resident) weight."""
    if _buffered_weights_supported():
        return pl.BlockSpec(shape, index_map, pipeline_mode=pl.Buffered(1))
    return pl.BlockSpec(shape, index_map)


def _weight_vmem_mult():
    return 1 if _buffered_weights_supported() else 2


# ---------------------------------------------------------------------------
# AdaptiveController: halt predictor (Linear->GELU->Linear->Sigmoid) and
# importance predictor (Linear->GELU->Linear->Softmax), fused.
#   w1 = [w1h | w1i]  (H, 2*Hh)   one first-layer matmul
#   w2 = block-diag([w2h -> lane 0, w2i -> lanes 1..L], padded to 128 lanes)
# Output is a lane-dense [N, P>=128] pack: [halt | importance | zeros].
# ---------------------------------------------------------------------------
def _controller_kernel(x_ref, w1_ref, b1_ref, w2_ref, b2_ref, out_ref, *,
                       num_layers):
    x = x_ref[...]                                                   # [TM, H] bf16
    h1 = _gelu_exact(
        jnp.dot(x, w1_ref[...], preferred_element_type=jnp.float32)
        + b1_ref[...])                                               # [TM, 2*Hh]
    logits = (jnp.dot(h1.astype(jnp.bfloat16), w2_ref[...],
                      preferred_element_type=jnp.float32)
              + b2_ref[...])                                         # [TM, P]
    tm, p = logits.shape
    lane = jax.lax.broadcasted_iota(jnp.int32, (tm, p), 1)
    is_imp = (lane >= 1) & (lane < 1 + num_layers)
    imp_logits = jnp.where(is_imp, logits, -jnp.inf)
    m = jnp.max(imp_logits, axis=-1, keepdims=True)
    e = jnp.exp(imp_logits - m)                                      # 0 on pad lanes
    imp = e / jnp.sum(e, axis=-1, keepdims=True)
    halt = jax.nn.sigmoid(logits)
    # lane 0 -> halt prob, lanes 1..L -> importance softmax, rest -> 0.
    out_ref[...] = jnp.where(lane == 0, halt, imp)


def adaptive_controller(hidden_states, params, num_layers, pack_width):
    B, S, H = hidden_states.shape
    N = B * S
    xf = hidden_states.reshape(N, H).astype(jnp.bfloat16)

    TM_PREF = 512                      # mem-bound: bigger row tile, fewer grid steps
    if N <= TM_PREF:
        n_pad = _round_up(N, 8)
        tm = n_pad
    else:
        n_pad = _round_up(N, TM_PREF)
        tm = TM_PREF
    if n_pad != N:
        # Padded rows are sliced off on the host below ([:N] invariant).
        xf = jnp.pad(xf, ((0, n_pad - N), (0, 0)))

    w1, b1, w2, b2 = params["w1"], params["b1"], params["w2"], params["b2"]
    P = pack_width
    weights = (w1, b1, w2, b2)
    wmult = _weight_vmem_mult()

    packed = pl.pallas_call(
        functools.partial(_controller_kernel, num_layers=num_layers),
        grid=(n_pad // tm,),
        in_specs=[pl.BlockSpec((tm, H), lambda i: (i, 0))]           # activations
                 + [_weight_spec(w.shape, lambda i: (0, 0)) for w in weights],
        out_specs=pl.BlockSpec((tm, P), lambda i: (i, 0)),
        out_shape=jax.ShapeDtypeStruct((n_pad, P), jnp.float32),
        compiler_params=pltpu.CompilerParams(
            dimension_semantics=("parallel",),
            vmem_limit_bytes=_vmem_limit(
                dbl_bytes=[tm * H * 2, tm * P * 4],
                single_bytes=[wmult * _nbytes(w) for w in weights])),
    )(xf, *weights)

    halt = packed[:N, 0:1].reshape(B, S, 1)
    imp = packed[:N, 1:1 + num_layers].reshape(B, S, num_layers)
    return halt, imp


# ---------------------------------------------------------------------------
# AdaptiveTransformerLayer, kernel 1: QKV projection prologue (once per layer).
# Q is pre-scaled by 1/sqrt(H); all outputs are bf16.
# ---------------------------------------------------------------------------
def _qkv_proj_kernel(x_ref, wq_ref, wk_ref, wv_ref, q_ref, k_ref, v_ref, *, scale):
    x = x_ref[0]                                                     # [TM, H] bf16
    q = jnp.dot(x, wq_ref[...], preferred_element_type=jnp.float32) * scale
    k = jnp.dot(x, wk_ref[...], preferred_element_type=jnp.float32)
    v = jnp.dot(x, wv_ref[...], preferred_element_type=jnp.float32)
    q_ref[0] = q.astype(q_ref.dtype)
    k_ref[0] = k.astype(k_ref.dtype)
    v_ref[0] = v.astype(v_ref.dtype)


# ---------------------------------------------------------------------------
# AdaptiveTransformerLayer, kernel 2: flash-style attention (KV-tiled online
# softmax) + output projection + F-tiled GELU FFN + importance-scaled residual:
#   out = x + layer(x) * importance.
# Grid: (batch, q_tiles, kv_tiles); kv axis is the innermost reduction.
# ---------------------------------------------------------------------------
def _attn_ffn_kernel(x_ref, q_ref, k_ref, v_ref, imp_ref,
                     wo_ref, w1_ref, b1_ref, w2_ref, b2_ref,
                     out_ref, m_sc, l_sc, acc_sc, *, ffn_chunk):
    ki = pl.program_id(2)
    nk = pl.num_programs(2)

    @pl.when(ki == 0)
    def _init():
        m_sc[...] = jnp.full_like(m_sc, -jnp.inf)
        l_sc[...] = jnp.zeros_like(l_sc)
        acc_sc[...] = jnp.zeros_like(acc_sc)

    q = q_ref[0]                                                     # [TQ, H] bf16, pre-scaled
    k = k_ref[0]                                                     # [TK, H] bf16
    # scores [TQ, TK]: contract over H on both sides (no explicit transpose)
    s = jax.lax.dot_general(q, k, (((1,), (1,)), ((), ())),
                            preferred_element_type=jnp.float32)
    # TODO(synk): attention_mask (when not None) is not applied inside the kernel.

    m_prev = m_sc[...]
    m_new = jnp.maximum(m_prev, jnp.max(s, axis=-1, keepdims=True))
    alpha = jnp.exp(m_prev - m_new)
    p = jnp.exp(s - m_new)
    l_sc[...] = alpha * l_sc[...] + jnp.sum(p, axis=-1, keepdims=True)
    acc_sc[...] = alpha * acc_sc[...] + jnp.dot(
        p.astype(jnp.bfloat16), v_ref[0], preferred_element_type=jnp.float32)
    m_sc[...] = m_new

    @pl.when(ki == nk - 1)
    def _finalize():
        ctx = acc_sc[...] * pl.reciprocal(l_sc[...], approx=True)    # [TQ, H]
        a = jnp.dot(ctx.astype(jnp.bfloat16), wo_ref[...],
                    preferred_element_type=jnp.float32).astype(jnp.bfloat16)
        tq = a.shape[0]
        ffn_dim = w1_ref.shape[1]
        h_dim = w2_ref.shape[1]
        # F-tiled FFN: never materialize the [TQ, 4H] hidden activation at once.
        y = jnp.zeros((tq, h_dim), jnp.float32) + b2_ref[...]
        for c in range(ffn_dim // ffn_chunk):
            lo = c * ffn_chunk
            hi = lo + ffn_chunk
            h = _gelu_exact(
                jnp.dot(a, w1_ref[:, lo:hi],
                        preferred_element_type=jnp.float32) + b1_ref[:, lo:hi])
            y = y + jnp.dot(h.astype(jnp.bfloat16), w2_ref[lo:hi, :],
                            preferred_element_type=jnp.float32)
        # residual + importance scaling ([TQ,1] broadcast over H)
        out = x_ref[0].astype(jnp.float32) + y * imp_ref[0]
        out_ref[0] = out.astype(out_ref.dtype)


def adaptive_transformer_layer(hidden_states, layer_importance, lp):
    """hidden_states [B,S,H] (bf16 stream); layer_importance [B,S,1] f32."""
    B, S, H = hidden_states.shape
    hidden_states = hidden_states.astype(jnp.bfloat16)
    layer_importance = layer_importance.astype(jnp.float32)
    scale = 1.0 / math.sqrt(H)
    wmult = _weight_vmem_mult()

    # ---- QKV projections: once per layer, not once per q-tile ----
    TM = _pick_tile(S, 256)
    wq, wk, wv = lp["wq"], lp["wk"], lp["wv"]
    qkv_w_specs = [_weight_spec(w.shape, lambda b, i: (0, 0)) for w in (wq, wk, wv)]
    act_blk = TM * H * 2
    q, k, v = pl.pallas_call(
        functools.partial(_qkv_proj_kernel, scale=scale),
        grid=(B, S // TM),
        in_specs=[pl.BlockSpec((1, TM, H), lambda b, i: (b, i, 0))] + qkv_w_specs,
        out_specs=(pl.BlockSpec((1, TM, H), lambda b, i: (b, i, 0)),
                   pl.BlockSpec((1, TM, H), lambda b, i: (b, i, 0)),
                   pl.BlockSpec((1, TM, H), lambda b, i: (b, i, 0))),
        out_shape=(jax.ShapeDtypeStruct((B, S, H), jnp.bfloat16),
                   jax.ShapeDtypeStruct((B, S, H), jnp.bfloat16),
                   jax.ShapeDtypeStruct((B, S, H), jnp.bfloat16)),
        compiler_params=pltpu.CompilerParams(
            dimension_semantics=("parallel", "parallel"),
            vmem_limit_bytes=_vmem_limit(
                dbl_bytes=[act_blk] * 4,
                single_bytes=[wmult * _nbytes(w) for w in (wq, wk, wv)])),
    )(hidden_states, wq, wk, wv)

    # ---- flash attention + output proj + tiled FFN + importance residual ----
    TQ = _pick_tile(S, 128)
    TK = _pick_tile(S, 256)
    F = lp["w1"].shape[1]
    ffn_chunk = _pick_chunk(F, 512)
    weights = tuple(lp[n] for n in ("wo", "w1", "b1", "w2", "b2"))
    w_specs = [_weight_spec(w.shape, lambda b, qi, ki: (0, 0)) for w in weights]

    in_specs = [
        pl.BlockSpec((1, TQ, H), lambda b, qi, ki: (b, qi, 0)),   # x (residual)
        pl.BlockSpec((1, TQ, H), lambda b, qi, ki: (b, qi, 0)),   # q (pre-scaled)
        pl.BlockSpec((1, TK, H), lambda b, qi, ki: (b, ki, 0)),   # k
        pl.BlockSpec((1, TK, H), lambda b, qi, ki: (b, ki, 0)),   # v
        pl.BlockSpec((1, TQ, 1), lambda b, qi, ki: (b, qi, 0)),   # importance
    ] + w_specs

    scratch_shapes = [
        pltpu.VMEM((TQ, 1), jnp.float32),    # running max
        pltpu.VMEM((TQ, 1), jnp.float32),    # running sum
        pltpu.VMEM((TQ, H), jnp.float32),    # attention accumulator
    ]

    dbl_bytes = [TQ * H * 2, TQ * H * 2, TK * H * 2, TK * H * 2,
                 TQ * 128 * 4, TQ * H * 2]
    single_bytes = [wmult * _nbytes(w) for w in weights]
    scratch_bytes = 2 * TQ * 128 * 4 + TQ * H * 4

    # TODO(synk): cross-call prefetch of the *next* layer's weights (P10: sem +
    # VMEM refs started during layer i) is not implemented; per-layer weight DMA
    # is hidden only by this kernel's own pipeline.
    return pl.pallas_call(
        functools.partial(_attn_ffn_kernel, ffn_chunk=ffn_chunk),
        grid=(B, S // TQ, S // TK),
        in_specs=in_specs,
        out_specs=pl.BlockSpec((1, TQ, H), lambda b, qi, ki: (b, qi, 0)),
        out_shape=jax.ShapeDtypeStruct((B, S, H), jnp.bfloat16),
        scratch_shapes=scratch_shapes,
        compiler_params=pltpu.CompilerParams(
            dimension_semantics=("parallel", "parallel", "arbitrary"),
            vmem_limit_bytes=_vmem_limit(dbl_bytes, single_bytes, scratch_bytes)),
    )(hidden_states, q, k, v, layer_importance, *weights)


# ---------------------------------------------------------------------------
# AdaptiveInference: host-side orchestration (layer skipping / early exit /
# metrics are data-dependent Python control flow, same as the PyTorch module),
# with a single device->host sync for all control scalars.
# ---------------------------------------------------------------------------
class AdaptiveInferencePallas:
    def __init__(self, hidden_size, num_layers, early_exit_threshold=0.9, seed=0):
        H, L = hidden_size, num_layers
        Hh, F = H // 2, 4 * H
        self.hidden_size, self.num_layers = H, L
        key = jax.random.PRNGKey(seed)
        ks = jax.random.split(key, 1 + num_layers)

        def lin(k, fan_in, fan_out):
            return 0.02 * jax.random.normal(k, (fan_in, fan_out), jnp.float32)

        # ---- controller (fused/packed weights) ----
        kc = jax.random.split(ks[0], 4)
        w1h, w2h = lin(kc[0], H, Hh), lin(kc[1], Hh, 1)
        w1i, w2i = lin(kc[2], H, Hh), lin(kc[3], Hh, L)
        P = max(128, _round_up(1 + L, 128))
        w1c = jnp.concatenate([w1h, w1i], axis=1)                     # [H, 2Hh]
        b1c = jnp.zeros((1, 2 * Hh), jnp.float32)
        w2p = jnp.zeros((2 * Hh, P), jnp.float32)
        w2p = w2p.at[:Hh, 0:1].set(w2h)           # halt head -> lane 0
        w2p = w2p.at[Hh:, 1:1 + L].set(w2i)       # importance head -> lanes 1..L
        b2p = jnp.zeros((1, P), jnp.float32)
        self.controller_params = {
            "w1": w1c.astype(jnp.bfloat16), "b1": b1c,
            "w2": w2p.astype(jnp.bfloat16), "b2": b2p,
        }
        self.ctrl_pack = P

        # ---- adaptive layers (bf16 weights, f32 biases) ----
        # TODO(synk): on v7x, fp8 weight storage (bf16 activations) would halve
        # weight DMA / VMEM residency; kept bf16 here pending accuracy validation.
        self.layer_params = []
        for i in range(num_layers):
            kl = jax.random.split(ks[1 + i], 6)
            self.layer_params.append({
                "wq": lin(kl[0], H, H).astype(jnp.bfloat16),
                "wk": lin(kl[1], H, H).astype(jnp.bfloat16),
                "wv": lin(kl[2], H, H).astype(jnp.bfloat16),
                "wo": lin(kl[3], H, H).astype(jnp.bfloat16),
                "w1": lin(kl[4], H, F).astype(jnp.bfloat16),
                "b1": jnp.zeros((1, F), jnp.float32),
                "w2": lin(kl[5], F, H).astype(jnp.bfloat16),
                "b2": jnp.zeros((1, H), jnp.float32),
            })
        # nn.Parameter(torch.tensor(0.5)) per adaptive layer
        self.layer_thresholds = [0.5] * num_layers
        self.early_exit_threshold = early_exit_threshold
        self.training = False

    def __call__(self, hidden_states, attention_mask=None):
        # TODO(synk): attention_mask (None in the demo) is not applied in-kernel.
        in_dtype = hidden_states.dtype
        hs = hidden_states.astype(jnp.bfloat16)          # bf16 activation stream
        halt_prob, importance_scores = adaptive_controller(
            hs, self.controller_params, self.num_layers, self.ctrl_pack)

        # All control-flow scalars & metrics in ONE device->host transfer.
        thr = jnp.asarray(self.layer_thresholds, jnp.float32).reshape(1, 1, -1)
        halt_mean_d = jnp.mean(halt_prob)
        imp_means_d = jnp.mean(importance_scores, axis=(0, 1))           # [L]
        comp_fracs_d = jnp.mean(
            (importance_scores > thr).astype(jnp.float32), axis=(0, 1))  # [L]
        halt_mean_h, imp_means_h, comp_fracs_h = jax.device_get(
            (halt_mean_d, imp_means_d, comp_fracs_d))
        halt_mean = float(halt_mean_h)
        imp_means = [float(v) for v in imp_means_h]
        comp_fracs = [float(v) for v in comp_fracs_h]

        metrics = {
            "halt_prob": halt_mean,
            "importance_scores": imp_means,
            "remaining_budget": 1.0,    # mean of ones(B, S)
        }

        num_layers = self.num_layers
        total_computation = 0.0
        layer_idx = 0
        for layer_idx in range(num_layers):
            # skip layer if importance.mean() < threshold (run if >=, as in PyTorch)
            if imp_means[layer_idx] >= self.layer_thresholds[layer_idx]:
                layer_importance = importance_scores[:, :, layer_idx:layer_idx + 1]
                hs = adaptive_transformer_layer(
                    hs, layer_importance, self.layer_params[layer_idx])
            # PyTorch counts strictly-greater-than for the computation metric
            total_computation += comp_fracs[layer_idx]
            if (not self.training) and halt_mean > self.early_exit_threshold \
                    and layer_idx >= num_layers // 2:
                break

        metrics.update({
            "num_layers_used": layer_idx + 1,
            "total_computation": total_computation,
            "early_exit": layer_idx < num_layers - 1,
        })
        return hs.astype(in_dtype), metrics


if __name__ == "__main__":
    B, S, H, L = 2, 8, 32, 2
    key = jax.random.PRNGKey(0)
    x = jax.random.normal(key, (B, S, H), dtype=jnp.float32)

    model = AdaptiveInferencePallas(hidden_size=H, num_layers=L, seed=0)

    # Exercise the layer kernels explicitly (adaptive skipping could bypass them).
    y_smoke = adaptive_transformer_layer(
        x.astype(jnp.bfloat16), jnp.ones((B, S, 1), jnp.float32),
        model.layer_params[0])
    jax.block_until_ready(y_smoke)
    assert y_smoke.shape == (B, S, H)

    out, metrics = model(x, attention_mask=None)
    jax.block_until_ready(out)
    assert out.shape == (B, S, H)
    assert out.dtype == x.dtype
    assert "num_layers_used" in metrics and "total_computation" in metrics
    print("KERNEL_OK")
</pallas_src>

<mosaic_0001>
module attributes {stable_mosaic.version = 11 : i64} {
  func.func @_probe(%arg0: i32, %arg1: memref<8x128xf32, #tpu.memory_space<vmem>>, %arg2: memref<8x128xf32, #tpu.memory_space<vmem>>) attributes {dimension_semantics = [#tpu.dimension_semantics<arbitrary>], iteration_bounds = array<i64: 1>, scalar_prefetch = 0 : i64, scratch_operands = 0 : i64, tpu.core_type = #tpu.core_type<tc>, window_params = [{pipeline_mode = #tpu.pipeline_mode<synchronous>, transform_indices = @transform_0, window_bounds = array<i64: 8, 128>}, {pipeline_mode = #tpu.pipeline_mode<synchronous>, transform_indices = @transform_1, window_bounds = array<i64: 8, 128>}]} {
    %c0 = arith.constant 0 : index
    %c0_0 = arith.constant 0 : index
    %0 = vector.load %arg1[%c0, %c0_0] : memref<8x128xf32, #tpu.memory_space<vmem>>, vector<8x128xf32>
    %cst = arith.constant 1.000000e+00 : f32
    %1 = vector.broadcast %cst : f32 to vector<8x128xf32>
    %2 = arith.addf %0, %1 : vector<8x128xf32>
    %c0_1 = arith.constant 0 : index
    %c0_2 = arith.constant 0 : index
    %3 = vector.load %arg2[%c0_1, %c0_2] : memref<8x128xf32, #tpu.memory_space<vmem>>, vector<8x128xf32>
    tpu.vector_store %arg2[%c0_1, %c0_2], %2 {strides = array<i32>} : memref<8x128xf32, #tpu.memory_space<vmem>>, vector<8x128xf32>,
    return
  }
  func.func @transform_0(%arg0: i32) -> (i32, i32) {
    %c0_i32 = arith.constant 0 : i32
    %c0_i32_0 = arith.constant 0 : i32
    %c0_i32_1 = arith.constant 0 : i32
    return %c0_i32, %c0_i32_0 : i32, i32
  }
  func.func @transform_1(%arg0: i32) -> (i32, i32) {
    %c0_i32 = arith.constant 0 : i32
    %c0_i32_0 = arith.constant 0 : i32
    %c0_i32_1 = arith.constant 0 : i32
    return %c0_i32, %c0_i32_0 : i32, i32
  }
}

module attributes {stable_mosaic.version = 11 : i64} {
  func.func @_qkv_proj_kernel(%arg0: i32, %arg1: i32, %arg2: memref<1x8x32xbf16, #tpu.memory_space<vmem>>, %arg3: memref<32x32xbf16, #tpu.memory_space<vmem>>, %arg4: memref<32x32xbf16, #tpu.memory_space<vmem>>, %arg5: memref<32x32xbf16, #tpu.memory_space<vmem>>, %arg6: memref<1x8x32xbf16, #tpu.memory_space<vmem>>, %arg7: memref<1x8x32xbf16, #tpu.memory_space<vmem>>, %arg8: memref<1x8x32xbf16, #tpu.memory_space<vmem>>) attributes {dimension_semantics = [#tpu.dimension_semantics<parallel>, #tpu.dimension_semantics<parallel>], iteration_bounds = array<i64: 2, 1>, scalar_prefetch = 0 : i64, scratch_operands = 0 : i64, tpu.core_type = #tpu.core_type<tc>, window_params = [{transform_indices = @transform_0, window_bounds = array<i64: 1, 8, 32>}, {pipeline_mode = #tpu.pipeline_mode<synchronous>, transform_indices = @transform_1, window_bounds = array<i64: 32, 32>}, {pipeline_mode = #tpu.pipeline_mode<synchronous>, transform_indices = @transform_2, window_bounds = array<i64: 32, 32>}, {pipeline_mode = #tpu.pipeline_mode<synchronous>, transform_indices = @transform_3, window_bounds = array<i64: 32, 32>}, {transform_indices = @transform_4, window_bounds = array<i64: 1, 8, 32>}, {transform_indices = @transform_5, window_bounds = array<i64: 1, 8, 32>}, {transform_indices = @transform_6, window_bounds = array<i64: 1, 8, 32>}]} {
    %c0 = arith.constant 0 : index
    %c0_0 = arith.constant 0 : index
    %c0_1 = arith.constant 0 : index
    %0 = vector.load %arg2[%c0, %c0_0, %c0_1] : memref<1x8x32xbf16, #tpu.memory_space<vmem>>, vector<1x8x32xbf16>
    %1 = vector.shape_cast %0 : vector<1x8x32xbf16> to vector<8x32xbf16>
    %c0_2 = arith.constant 0 : index
    %c0_3 = arith.constant 0 : index
    %2 = vector.load %arg3[%c0_2, %c0_3] : memref<32x32xbf16, #tpu.memory_space<vmem>>, vector<32x32xbf16>
    %cst = arith.constant dense<0.000000e+00> : vector<8x32xf32>
    %3 = tpu.matmul %1, %2, %cst {dimension_numbers = #tpu.dot_dimension_numbers<[1], [0], [0], [1], [0, 0, 1, 1], [], []>} : vector<8x32xbf16>, vector<32x32xbf16>, vector<8x32xf32> -> vector<8x32xf32>
    %cst_4 = arith.constant 0.176776692 : f32
    %4 = vector.broadcast %cst_4 : f32 to vector<8x32xf32>
    %5 = arith.mulf %3, %4 : vector<8x32xf32>
    %c0_5 = arith.constant 0 : index
    %c0_6 = arith.constant 0 : index
    %6 = vector.load %arg4[%c0_5, %c0_6] : memref<32x32xbf16, #tpu.memory_space<vmem>>, vector<32x32xbf16>
    %cst_7 = arith.constant dense<0.000000e+00> : vector<8x32xf32>
    %7 = tpu.matmul %1, %6, %cst_7 {dimension_numbers = #tpu.dot_dimension_numbers<[1], [0], [0], [1], [0, 0, 1, 1], [], []>} : vector<8x32xbf16>, vector<32x32xbf16>, vector<8x32xf32> -> vector<8x32xf32>
    %c0_8 = arith.constant 0 : index
    %c0_9 = arith.constant 0 : index
    %8 = vector.load %arg5[%c0_8, %c0_9] : memref<32x32xbf16, #tpu.memory_space<vmem>>, vector<32x32xbf16>
    %cst_10 = arith.constant dense<0.000000e+00> : vector<8x32xf32>
    %9 = tpu.matmul %1, %8, %cst_10 {dimension_numbers = #tpu.dot_dimension_numbers<[1], [0], [0], [1], [0, 0, 1, 1], [], []>} : vector<8x32xbf16>, vector<32x32xbf16>, vector<8x32xf32> -> vector<8x32xf32>
    %10 = arith.truncf %5 : vector<8x32xf32> to vector<8x32xbf16>
    %c0_11 = arith.constant 0 : index
    %c0_12 = arith.constant 0 : index
    %c0_13 = arith.constant 0 : index
    %11 = vector.load %arg6[%c0_11, %c0_12, %c0_13] : memref<1x8x32xbf16, #tpu.memory_space<vmem>>, vector<1x8x32xbf16>
    %12 = vector.shape_cast %11 : vector<1x8x32xbf16> to vector<8x32xbf16>
    %13 = vector.shape_cast %10 : vector<8x32xbf16> to vector<1x8x32xbf16>
    tpu.vector_store %arg6[%c0_11, %c0_12, %c0_13], %13 {strides = array<i32>} : memref<1x8x32xbf16, #tpu.memory_space<vmem>>, vector<1x8x32xbf16>,
    %14 = arith.truncf %7 : vector<8x32xf32> to vector<8x32xbf16>
    %c0_14 = arith.constant 0 : index
    %c0_15 = arith.constant 0 : index
    %c0_16 = arith.constant 0 : index
    %15 = vector.load %arg7[%c0_14, %c0_15, %c0_16] : memref<1x8x32xbf16, #tpu.memory_space<vmem>>, vector<1x8x32xbf16>
    %16 = vector.shape_cast %15 : vector<1x8x32xbf16> to vector<8x32xbf16>
    %17 = vector.shape_cast %14 : vector<8x32xbf16> to vector<1x8x32xbf16>
    tpu.vector_store %arg7[%c0_14, %c0_15, %c0_16], %17 {strides = array<i32>} : memref<1x8x32xbf16, #tpu.memory_space<vmem>>, vector<1x8x32xbf16>,
    %18 = arith.truncf %9 : vector<8x32xf32> to vector<8x32xbf16>
    %c0_17 = arith.constant 0 : index
    %c0_18 = arith.constant 0 : index
    %c0_19 = arith.constant 0 : index
    %19 = vector.load %arg8[%c0_17, %c0_18, %c0_19] : memref<1x8x32xbf16, #tpu.memory_space<vmem>>, vector<1x8x32xbf16>
    %20 = vector.shape_cast %19 : vector<1x8x32xbf16> to vector<8x32xbf16>
    %21 = vector.shape_cast %18 : vector<8x32xbf16> to vector<1x8x32xbf16>
    tpu.vector_store %arg8[%c0_17, %c0_18, %c0_19], %21 {strides = array<i32>} : memref<1x8x32xbf16, #tpu.memory_space<vmem>>, vector<1x8x32xbf16>,
    return
  }
  func.func @transform_0(%arg0: i32, %arg1: i32) -> (i32, i32, i32) {
    %c0_i32 = arith.constant 0 : i32
    %c0_i32_0 = arith.constant 0 : i32
    return %arg0, %arg1, %c0_i32 : i32, i32, i32
  }
  func.func @transform_1(%arg0: i32, %arg1: i32) -> (i32, i32) {
    %c0_i32 = arith.constant 0 : i32
    %c0_i32_0 = arith.constant 0 : i32
    %c0_i32_1 = arith.constant 0 : i32
    return %c0_i32, %c0_i32_0 : i32, i32
  }
  func.func @transform_2(%arg0: i32, %arg1: i32) -> (i32, i32) {
    %c0_i32 = arith.constant 0 : i32
    %c0_i32_0 = arith.constant 0 : i32
    %c0_i32_1 = arith.constant 0 : i32
    return %c0_i32, %c0_i32_0 : i32, i32
  }
  func.func @transform_3(%arg0: i32, %arg1: i32) -> (i32, i32) {
    %c0_i32 = arith.constant 0 : i32
    %c0_i32_0 = arith.constant 0 : i32
    %c0_i32_1 = arith.constant 0 : i32
    return %c0_i32, %c0_i32_0 : i32, i32
  }
  func.func @transform_4(%arg0: i32, %arg1: i32) -> (i32, i32, i32) {
    %c0_i32 = arith.constant 0 : i32
    %c0_i32_0 = arith.constant 0 : i32
    return %arg0, %arg1, %c0_i32 : i32, i32, i32
  }
  func.func @transform_5(%arg0: i32, %arg1: i32) -> (i32, i32, i32) {
    %c0_i32 = arith.constant 0 : i32
    %c0_i32_0 = arith.constant 0 : i32
    return %arg0, %arg1, %c0_i32 : i32, i32, i32
  }
  func.func @transform_6(%arg0: i32, %arg1: i32) -> (i32, i32, i32) {
    %c0_i32 = arith.constant 0 : i32
    %c0_i32_0 = arith.constant 0 : i32
    return %arg0, %arg1, %c0_i32 : i32, i32, i32
  }
}

</mosaic_0001>

<bundles_post_ra>
// kernel: tpu_custom_call.1
= control target key start
LH: loop header
LB: loop body
LE: loop exit
PB: predicated region body
PF: predicated region fallthrough
CT: control target
= control target key end

     0   :  { %6 = vsyncpa [#allocation3], 0  ;;  %s125_s0 = inlined_call_operand.hbm [shape: f32[8,128], index: 0, kind: input, shape index: {}]   ;;  %s126_s1 = inlined_call_operand.hbm [shape: f32[8,128], index: 1, kind: output, shape index: {}]  }
   0x1   :  { %7 = vsyncpa [#allocation4], 0  ;;  %s89_s6 = smov [#allocation2]   ;;  %s41_s10 = scalar_lea.hbm %s125_s0, 128 }
   0x2   :  { %s14_s7 = sshll.u32 %s89_s6, 4  ;;  %p42_p0 = scmp.ne.s32.totalorder %s125_s0, %s41_s10  ;;  %s15_s7 = int_to_ptr.vmem [resolvable:$true] %s14_s7 }
   0x3   :  { %p45_p1 = scmp.lt.u32.totalorder %s41_s10, %s125_s0 }
   0x5   :  { %p47_p2 = pnand %p45_p1, %p42_p0 }
   0x7   :  { %50 = shalt.err (!%p47_p2)
}
   0x8   :  { %s51_s15 = scalar_lea.vmem %s15_s7, 128  ;;  %p56_p4 = scmp.lt.s32.totalorder %s15_s7, %s15_s7 }
   0x9   :  { %p52_p3 = scmp.ne.s32.totalorder %s15_s7, %s51_s15  ;;  %p57_p5 = scmp.lt.s32.totalorder %s51_s15, %s51_s15 }
   0xb   :  { %p58_p6 = por %p57_p5, %p56_p4 }
   0xd   :  { %p59_p7 = pnand %p58_p6, %p52_p3 }
   0xf   :  { %62 = shalt.err (!%p59_p7)
}
  0x10   :  { %17 = dma.hbm_to_vmem [thread:$0]  %s125_s0, 128, %s15_s7, [#allocation3]  }
  0x11   :  { %85 = dma.done.wait [#allocation3], 128  }
  0x12   :  { %86 = vsyncadd [#allocation3], 4294967168  ;;  %s90_s18 = smov [#allocation5]   ;;  %v21_v0 = vld [vmem:[#allocation2] sm:$0xff] }
  0x13   :  { %s30_s19 = sshll.u32 %s90_s18, 4  ;;  %v22_v1 = vadd.f32 1.0, %v21_v0  ;;  %s31_s19 = int_to_ptr.vmem [resolvable:$true] %s30_s19 }
  0x14   :  { %s63_s20 = scalar_lea.vmem %s31_s19, 128  ;;  %p68_p9 = scmp.lt.s32.totalorder %s31_s19, %s31_s19 }
  0x15   :  { %23 = vst [vmem:[#allocation5] sm:$0xff] %v22_v1  ;;  %p64_p8 = scmp.ne.s32.totalorder %s31_s19, %s63_s20  ;;  %p69_p10 = scmp.lt.s32.totalorder %s63_s20, %s63_s20 }
  0x17   :  { %p70_p11 = por %p69_p10, %p68_p9 }
  0x19   :  { %p71_p12 = pnand %p70_p11, %p64_p8 }
  0x1b   :  { %74 = shalt.err (!%p71_p12)
}
  0x1c   :  { %s75_s23 = scalar_lea.hbm %s126_s1, 128 }
  0x1d   :  { %p76_p13 = scmp.ne.s32.totalorder %s126_s1, %s75_s23  ;;  %p79_p0 = scmp.lt.u32.totalorder %s75_s23, %s126_s1 }
  0x1f   :  { %p81_p1 = pnand %p79_p0, %p76_p13 }
  0x21   :  { %84 = shalt.err (!%p81_p1)
}
  0x22   :  { %33 = dma.vmem_to_hbm [thread:$0]  %s31_s19, 128, %s126_s1, [#allocation4]  }
  0x23   :  { %87 = dma.done.wait [#allocation4], 128  }
  0x24   :  { %88 = vsyncadd [#allocation4], 4294967168 }
  0x25   :  { %37 = vsyncpa [#allocation3], 1 }
  0x26   :  { %38 = vsyncpa [#allocation4], 1 }

// kernel: tpu_custom_call.1
= control target key start
LH: loop header
LB: loop body
LE: loop exit
PB: predicated region body
PF: predicated region fallthrough
CT: control target
= control target key end

     0   :  { %12 = vsyncpa [#allocation3], 0  ;;  %s1618_s0 = inlined_call_operand.hbm [shape: bf16[2,8,32], index: 0, kind: input, shape index: {}]   ;;  %s1619_s1 = inlined_call_operand.hbm [shape: bf16[32,32], index: 1, kind: input, shape index: {}]   ;;  %s1620_s2 = inlined_call_operand.hbm [shape: bf16[32,32], index: 2, kind: input, shape index: {}]   ;;  %s1621_s3 = inlined_call_operand.hbm [shape: bf16[32,32], index: 3, kind: input, shape index: {}]   ;;  %s1622_s4 = inlined_call_operand.hbm [shape: bf16[2,8,32], index: 4, kind: output, shape index: {0}]   ;;  %s1623_s5 = inlined_call_operand.hbm [shape: bf16[2,8,32], index: 5, kind: output, shape index: {1}]   ;;  %s1624_s6 = inlined_call_operand.hbm [shape: bf16[2,8,32], index: 6, kind: output, shape index: {2}]  }
   0x1   :  { %14 = vsyncpa [#allocation3 + $0x1], 0 }
   0x2   :  { %15 = vsyncpa [#allocation6], 0 }
   0x3   :  { %16 = vsyncpa [#allocation9], 0 }
   0x4   :  { %17 = vsyncpa [#allocation4], 0 }
   0x5   :  { %19 = vsyncpa [#allocation4 + $0x1], 0 }
   0x6   :  { %20 = vsyncpa [#allocation12], 0 }
   0x7   :  { %22 = vsyncpa [#allocation12 + $0x1], 0  ;;  %s1249_s21 = smov 0   ;;  %s1251_s22 = smov 0  }
   0x8   :  { %s1253_s23 = smov 0   ;;  %s1255_s24 = smov 0  }
   0x9   :  { %s1257_s25 = smov 0   ;;  %s1259_s26 = smov 0  }
   0xa LB: > { %1632 = sst [smem:[#allocation19_spill]] %s1181_s21  ;;  %s1280_s27 = sadd.s32 4294967295, %s1201_s26   ;;  %s1201_s26 = sphi %s1259_s26, %s28_s26   ;;  %s1197_s25 = sphi %s1257_s25, %s1658_s25   ;;  %s1193_s24 = sphi %s1255_s24, %s1657_s24   ;;  %s1189_s23 = sphi %s1253_s23, %s1656_s23   ;;  %s1185_s22 = sphi %s1251_s22, %s1655_s22   ;;  %s1181_s21 = sphi %s1249_s21, %s1654_s21  }
   0xb   : > { %s1626_s28 = sadd.s32 4294967294, %s1201_s26   ;;  %p62_p0 = scmp.ne.s32.totalorder %s1185_s22, %s1181_s21 }
   0xc   : > { %p1625_p1 = scmp.eq.s32.totalorder %s1280_s27, 0  ;;  %p157_p3 = scmp.eq.s32.totalorder %s1626_s28, 1 }
   0xd   : > { %p759_p5 = scmp.ge.s32.totalorder %s1201_s26, 1  ;;  %p220_p7 = scmp.lt.s32.totalorder %s1201_s26, 3 }
   0xe   : > { %p1291_p4 = por %p1625_p1, %p62_p0  ;;  %p1296_p6 = por %p157_p3, %p62_p0 }
   0xf   : > { %p1301_p8 = pnand %p759_p5, %p220_p7  ;;  %s1203_s8 = smov [#allocation5]  }
  0x10   : > { %s1633_s29 = scalar_select %p1291_p4, 1, 0 }
  0x11   : > { %s1634_s30 = scalar_select %p1296_p6, 1, 0 }
  0x12   : > { %s1636_s7 = scalar_select %p1301_p8, 1, 0 }
  0x13   : > { %1635 = sst [smem:[#allocation20_spill]] %s1634_s30  ;;  %s232_s9 = sshll.u32 %s1203_s8, 4  ;;  %s1305_s9 = int_to_ptr.vmem [resolvable:$true] %s232_s9 }
  0x14   : > { %p844_p9 = pneg %p1301_p8  ;;  %s1204_s11 = smov [#allocation7]  }
  0x15   : > { %s245_s12 = sshll.u32 %s1204_s11, 4  ;;  %s1205_s13 = smov [#allocation8]   ;;  %s1316_s12 = int_to_ptr.vmem [resolvable:$true] %s245_s12 }
  0x16   : > { %p1312_p11 = pnand %p844_p9, %p1625_p1  ;;  %s1318_s14 = sshll.u32 %s1205_s13, 4  ;;  %s259_s14 = int_to_ptr.vmem [resolvable:$true] %s1318_s14 }
  0x17   : > { %s937_s17 = scalar_lea.hbm %s1619_s1, 256 }
  0x18   : > { %p938_p12 = scmp.ne.s32.totalorder %s1619_s1, %s937_s17  ;;  %p1328_p13 = pneg %p1312_p11 }
  0x19   : > { %p944_p5 = scmp.lt.u32.totalorder %s937_s17, %s1619_s1 }
  0x1a   : > { %p940_p0 = pnand %p1328_p13, %p938_p12 }
  0x1c   : > { %p941_p3 = pneg %p940_p0 }
  0x1e   : > { %p946_p7 = pnand %p944_p5, %p941_p3 }
  0x20   : > { %949 = shalt.err (!%p946_p7)
}
  0x21   : > { %s950_s13 = scalar_lea.vmem %s1305_s9, 256  ;;  %p958_p2 = scmp.lt.s32.totalorder %s1305_s9, %s1305_s9 }
  0x22   : > { %p951_p9 = scmp.ne.s32.totalorder %s1305_s9, %s950_s13  ;;  %p959_p6 = scmp.lt.s32.totalorder %s950_s13, %s950_s13 }
  0x24   : > { %p953_p10 = pnand %p951_p9, %p1328_p13  ;;  %p960_p12 = por %p959_p6, %p958_p2 }
  0x26   : > { %p954_p1 = pneg %p953_p10 }
  0x28   : > { %p961_p0 = pnand %p960_p12, %p954_p1 }
  0x2a   : > { %964 = shalt.err (!%p961_p0)
}
  0x2b   : > { %s1206_s15 = smov 64   ;;  %s1207_s16 = smov 4  }
  0x2c   : > { %847 = dma.hbm_to_vmem [thread:$0]  (!%p1312_p11), %s1619_s1, 256, %s1305_s9, [#allocation6], %s1206_s15, %s1206_s15, %s1207_s16  }
  0x2d   : > { %s965_s11 = scalar_lea.hbm %s1620_s2, 256 }
  0x2e   : > { %p966_p1 = scmp.ne.s32.totalorder %s1620_s2, %s965_s11  ;;  %p972_p10 = scmp.lt.u32.totalorder %s965_s11, %s1620_s2 }
  0x30   : > { %p968_p2 = pnand %p966_p1, %p1328_p13 }
  0x32   : > { %p969_p6 = pneg %p968_p2 }
  0x34   : > { %p974_p3 = pnand %p972_p10, %p969_p6 }
  0x36   : > { %977 = shalt.err (!%p974_p3)
}
  0x37   : > { %s978_s9 = scalar_lea.vmem %s1316_s12, 256  ;;  %p986_p12 = scmp.lt.s32.totalorder %s1316_s12, %s1316_s12 }
  0x38   : > { %p979_p5 = scmp.ne.s32.totalorder %s1316_s12, %s978_s9  ;;  %p987_p0 = scmp.lt.s32.totalorder %s978_s9, %s978_s9 }
  0x3a   : > { %p981_p7 = pnand %p979_p5, %p1328_p13  ;;  %p988_p1 = por %p987_p0, %p986_p12 }
  0x3c   : > { %p982_p9 = pneg %p981_p7 }
  0x3e   : > { %p989_p2 = pnand %p988_p1, %p982_p9 }
  0x40   : > { %992 = shalt.err (!%p989_p2)
}
  0x41   : > { %850 = dma.hbm_to_vmem [thread:$0]  (!%p1312_p11), %s1620_s2, 256, %s1316_s12, [#allocation6], %s1206_s15, %s1206_s15, %s1207_s16  }
  0x42   : > { %s993_s18 = scalar_lea.hbm %s1621_s3, 256 }
  0x43   : > { %p994_p6 = scmp.ne.s32.totalorder %s1621_s3, %s993_s18  ;;  %p1000_p5 = scmp.lt.u32.totalorder %s993_s18, %s1621_s3 }
  0x45   : > { %p996_p10 = pnand %p994_p6, %p1328_p13 }
  0x47   : > { %p997_p3 = pneg %p996_p10 }
  0x49   : > { %p1002_p7 = pnand %p1000_p5, %p997_p3 }
  0x4b   : > { %1005 = shalt.err (!%p1002_p7)
}
  0x4c   : > { %s1006_s9 = scalar_lea.vmem %s259_s14, 256  ;;  %p1014_p1 = scmp.lt.s32.totalorder %s259_s14, %s259_s14 }
  0x4d   : > { %p1007_p9 = scmp.ne.s32.totalorder %s259_s14, %s1006_s9  ;;  %p1015_p2 = scmp.lt.s32.totalorder %s1006_s9, %s1006_s9 }
  0x4f   : > { %p1009_p12 = pnand %p1007_p9, %p1328_p13  ;;  %p1016_p4 = por %p1015_p2, %p1014_p1 }
  0x51   : > { %p1010_p0 = pneg %p1009_p12 }
  0x53   : > { %p1017_p8 = pnand %p1016_p4, %p1010_p0 }
  0x55   : > { %1020 = shalt.err (!%p1017_p8)
}
  0x56   : > { %853 = dma.hbm_to_vmem [thread:$0]  (!%p1312_p11), %s1621_s3, 256, %s259_s14, [#allocation9], %s1206_s15, %s1206_s15, %s1207_s16  }
  0x57   : > { %s49_s20 = sadd.s32 1, %s1189_s23  ;;  %s40_s10 = sadd.s32 1, %s1197_s25 }
  0x58   : > { %p56_p4 = scmp.ne.s32.totalorder %s1189_s23, %s1185_s22  ;;  %p42_p8 = scmp.ge.s32.totalorder %s40_s10, 2 }
  0x59   : > { %p57_p13 = scmp.eq.s32.totalorder %s1201_s26, 0  ;;  %p1639_p6 = scmp.eq.s32.totalorder %s1280_s27, 1 }
  0x5a   : > { %p871_p3 = scmp.lt.s32.totalorder %s1201_s26, 2  ;;  %s1660_s10 = smov (%p42_p8, %s40_s10), 0 }
  0x5b   : > { %p1407_p10 = por %p1639_p6, %p56_p4  ;;  %p58_p5 = por %p57_p13, %p56_p4 }
  0x5c   : > { %s272_s30 = sand.u32 1, %s1189_s23   ;;  %s44_s17 = ssub.s32 %s1197_s25, %s1660_s10 }
  0x5d   : > { %p47_p7 = scmp.eq.s32.totalorder %s44_s17, 0  ;;  %s764_s14 = sshll.u32 %s272_s30, 2 }
  0x5e   : > { %s765_s15 = sshll.u32 %s1197_s25, 6  ;;  %s276_s11 = scalar_lea.vmem [#allocation2], %s764_s14 }
  0x5f   : > { %s1419_s16 = scalar_select %p47_p7, %s1189_s23, %s49_s20  }
  0x60   : > { %s1424_s8 = scalar_lea.hbm %s1618_s0, %s765_s15  ;;  %s284_s13 = sshll.u32 %s276_s11, 4  ;;  %s1426_s13 = int_to_ptr.vmem [resolvable:$true] %s284_s13 }
  0x61   : > { %p1430_p11 = pnand %p871_p3, %p58_p5  ;;  %s273_s12 = scalar_lea.sflag [#allocation3], %s272_s30 }
  0x62   : > { %s1021_s21 = scalar_lea.hbm %s1424_s8, 64  ;;  %s1026_s14 = scalar_lea.hbm %s1618_s0, 128 }
  0x63   : > { %p1022_p9 = scmp.ne.s32.totalorder %s1424_s8, %s1021_s21  ;;  %p1023_p12 = pneg %p1430_p11 }
  0x64   : > { %p1027_p2 = scmp.lt.u32.totalorder %s1424_s8, %s1618_s0  ;;  %p1028_p4 = scmp.lt.u32.totalorder %s1026_s14, %s1021_s21 }
  0x65   : > { %p1024_p0 = pnand %p1023_p12, %p1022_p9  ;;  %p1030_p13 = scmp.lt.u32.totalorder %s1021_s21, %s1424_s8 }
  0x66   : > { %p1029_p8 = por %p1028_p4, %p1027_p2 }
  0x67   : > { %p1025_p1 = pneg %p1024_p0 }
  0x68   : > { %p1031_p6 = por %p1030_p13, %p1029_p8 }
  0x6a   : > { %p1032_p3 = pnand %p1031_p6, %p1025_p1 }
  0x6c   : > { %1035 = shalt.err (!%p1032_p3)
}
  0x6d   : > { %s1036_s30 = scalar_lea.vmem %s1426_s13, 64  ;;  %s1208_s19 = smov [#allocation2]  }
  0x6e   : > { %p1037_p5 = scmp.ne.s32.totalorder %s1426_s13, %s1036_s30  ;;  %s1041_s11 = sshll.u32 %s1208_s19, 4  ;;  %s1042_s11 = int_to_ptr.vmem [resolvable:$false] %s1041_s11 }
  0x6f   : > { %s1043_s20 = scalar_lea.vmem %s1042_s11, 128  ;;  %p1044_p0 = scmp.lt.s32.totalorder %s1426_s13, %s1042_s11 }
  0x70   : > { %p1039_p7 = pnand %p1037_p5, %p1023_p12  ;;  %p1045_p2 = scmp.lt.s32.totalorder %s1043_s20, %s1036_s30 }
  0x72   : > { %p1040_p9 = pneg %p1039_p7  ;;  %p1046_p4 = por %p1045_p2, %p1044_p0 }
  0x74   : > { %p1047_p8 = pnand %p1046_p4, %p1040_p9 }
  0x76   : > { %1050 = shalt.err (!%p1047_p8)
}
  0x77   : > { %857 = dma.hbm_to_vmem [thread:$0]  (!%p1430_p11), %s1424_s8, 64, %s1426_s13, %s273_s12  }
  0x78   : > { %p1642_p1 = scmp.ne.s32.totalorder %s1636_s7, 0 }
  0x79   : > { %s1462_s21 = sand.u32 (!%p1642_p1), 1, %s1185_s22   ;;  %p1643_p12 = scmp.ne.s32.totalorder (!%p1642_p1), %s1633_s29, 0 }
  0x7a   : > { %293 = sbr.rel (%p1642_p1) target bundleno = 422 (0x1a6), region = 36  ;;  %s1465_s17 = sshll.u32 (!%p1642_p1), %s1462_s21, 2 }
  0x7b   : > { %s296_s14 = scalar_lea.sflag (!%p1642_p1), [#allocation3], %s1462_s21  ;;  %s299_s15 = scalar_lea.vmem (!%p1642_p1), [#allocation2], %s1465_s17 }
  0x81   : > { %1160 = dma.done.wait (%p1643_p12), %s296_s14, 64  }
  0x82   : > { %1162 = vsyncadd (%p1643_p12), %s296_s14, 4294967232  ;;  %p1644_p11 = scmp.eq.s32.totalorder %s1280_s27, 0 }
  0x84   : > { %1164 = dma.done.wait (%p1644_p11), [#allocation6], 512   ;;  %p1645_p13 = pmov %p1644_p11 }
  0x85   : > { %p1646_p6 = pmov %p1644_p11 }
  0x86   : > { %1166 = vsyncadd (%p1645_p13), [#allocation6], 4294966784 }
  0x87   : > { %1168 = dma.done.wait (%p1646_p6), [#allocation9], 256   ;;  %p1647_p3 = pmov %p1646_p6 }
  0x88   : > { %v1209_v0 = vmov 0.0   ;;  %vm1210_vm0 = vmmov 0   ;;  %v931_v1 = vld [vmem:[#allocation5] sm:$0xff]   ;;  %v932_v2 = vld [vmem:[#allocation5 + $0x8] sm:$0xff]   ;;  %v933_v3 = vld [vmem:[#allocation7] sm:$0xff]   ;;  %vm368_vm1 = vcmask 261120  }
  0x89   : > { %1170 = vsyncadd (%p1647_p3), [#allocation9], 4294967040  ;;  %800 = vmatprep.subr.bf16.mxu0 %v1209_v0  ;;  %808 = vmatprep.subr.bf16.mxu1 %v1209_v0  ;;  %v935_v4 = vld [vmem:[#allocation7 + $0x8] sm:$0xff]   ;;  %v934_v6 = vld [vmem:[#allocation8] sm:$0xff]   ;;  %s537_s29 = sand.u32 1, %s1280_s27   ;;  %s1486_s7 = sshll.u32 %s1193_s24, 6 }
  0x8a   : > { %804 = vmatprep.mubr.msk.bf16.mxu0 %vm1210_vm0, %v1209_v0  ;;  %812 = vmatprep.mubr.msk.bf16.mxu1 %vm1210_vm0, %v1209_v0  ;;  %v351_v5 = vld [vmem:[%s299_s15] sm:$0xf]  ;;  %v936_v7 = vld [vmem:[#allocation8 + $0x8] sm:$0xff]   ;;  %s342_s8 = scalar_lea.vmem [#allocation11], %s1465_s17  ;;  %s335_s9 = scalar_lea.vmem [#allocation10], %s1465_s17  ;;  %vm526_vm2 = vcmask 257024  }
  0x8b   : > { %801 = vmatpush3.bf16.msra.mxu0 %v931_v1  ;;  %809 = vmatpush3.bf16.msra.mxu1 %v933_v3  ;;  %s571_s13 = sshll.u32 %s342_s8, 4  ;;  %s557_s12 = sshll.u32 %s335_s9, 4  ;;  %s1496_s13 = int_to_ptr.vmem [resolvable:$true] %s571_s13  ;;  %s1504_s12 = int_to_ptr.vmem [resolvable:$true] %s557_s12 }
  0x8c   : > { %802 = vmatprep.subr.bf16.mxu0 %v1209_v0  ;;  %810 = vmatprep.subr.bf16.mxu1 %v1209_v0  ;;  %s1494_s27 = scalar_lea.hbm %s1623_s5, %s1486_s7  ;;  %s1502_s11 = scalar_lea.hbm %s1622_s4, %s1486_s7 }
  0x8d   : > { %s1631_s20 = scalar_lea.vmem [#allocation13], %s1465_s17  ;;  %s1513_s15 = scalar_lea.sflag [#allocation12], %s537_s29 }
  0x8e   : > { %s1511_s14 = sshll.u32 %s1631_s20, 4  ;;  %s1051_s18 = scalar_lea.vmem %s1496_s13, 64  ;;  %s1566_s14 = int_to_ptr.vmem [resolvable:$true] %s1511_s14 }
  0x8f   : > { %803 = vmatpush3.bf16.msra.mxu0 %v932_v2  ;;  %811 = vmatpush3.bf16.msra.mxu1 %v935_v4  ;;  %p1052_p5 = scmp.ne.s32.totalorder %s1496_s13, %s1051_s18  ;;  %s1211_s30 = smov [#allocation11]  }
  0x90   : > { %816 = vmatprep.subr.bf16.mxu0 %v1209_v0  ;;  %s1055_s24 = sshll.u32 %s1211_s30, 4  ;;  %s1056_s24 = int_to_ptr.vmem [resolvable:$false] %s1055_s24 }
  0x91   : > { %p1053_p7 = pnand %p1052_p5, %p1407_p10  ;;  %s1057_s19 = scalar_lea.vmem %s1056_s24, 128 }
  0x92   : > { %805 = vmatmul.mubr.msk.bf16.vlgmr.msra.gmra.mrb[0].mxu0 %vm368_vm1, %v351_v5  ;;  %813 = vmatmul.mubr.msk.bf16.vlgmr.msra.gmra.mrb[0].mxu1 %vm368_vm1, %v351_v5  ;;  %p1058_p0 = scmp.lt.s32.totalorder %s1496_s13, %s1056_s24  ;;  %p1059_p2 = scmp.lt.s32.totalorder %s1057_s19, %s1051_s18 }
  0x93   : > { %817 = vmatpush3.bf16.msra.mxu0 %v934_v6  ;;  %820 = vmatprep.mubr.msk.bf16.mxu0 %vm1210_vm0, %v1209_v0  ;;  %p1054_p9 = pneg %p1053_p7 }
  0x94   : > { %818 = vmatprep.subr.bf16.mxu0 %v1209_v0  ;;  %p1060_p4 = por %p1059_p2, %p1058_p0 }
  0x96   : > { %p1061_p8 = pnand %p1060_p4, %p1054_p9 }
  0x97   : > { %819 = vmatpush3.bf16.msra.mxu0 %v936_v7 }
  0x9a   : > { %821 = vmatmul.mubr.msk.bf16.vlgmr.msra.gmra.mrb[4].mxu0 %vm368_vm1, %v351_v5 }
 0x165   : > { %v406_v8 = vpop.f32.mrb[0].mxu0  ;;  %v463_v12 = vpop.f32.mrb[0].mxu1 }
 0x166   : > { %v412_v9 = vmul.f32 0.17677669, %v406_v8  ;;  %v806_v10 = vpop.f32.mrb[1].mxu0  ;;  %v528_v15 = vpack.c.bf16 %v463_v12, %v463_v12  ;;  %v814_v16 = vpop.f32.mrb[1].mxu1 }
 0x167   : > { %v409_v11 = vpop.f32.mrb[2].mxu0  ;;  %v466_v17 = vpop.f32.mrb[2].mxu1 }
 0x168   : > { %v525_v13 = vpack.c.bf16 %v412_v9, %v412_v9  ;;  %v807_v14 = vpop.f32.mrb[3].mxu0  ;;  %v815_v18 = vpop.f32.mrb[3].mxu1  ;;  %529 = vst.msk [vmem:[%s342_s8] sm:$0xf] %vm526_vm2, %v528_v15 }
 0x16a   : > { %527 = vst.msk [vmem:[%s335_s9] sm:$0xf] %vm526_vm2, %v525_v13 }
 0x16b   : > { %1064 = shalt.err (!%p1061_p8)
}
 0x16c   : > { %s1065_s29 = scalar_lea.hbm %s1494_s27, 64  ;;  %s1069_s30 = scalar_lea.hbm %s1623_s5, 128 }
 0x16d   : > { %p1066_p1 = scmp.ne.s32.totalorder %s1494_s27, %s1065_s29  ;;  %p1070_p13 = scmp.lt.u32.totalorder %s1494_s27, %s1623_s5 }
 0x16e   : > { %p1071_p6 = scmp.lt.u32.totalorder %s1069_s30, %s1065_s29  ;;  %p1073_p5 = scmp.lt.u32.totalorder %s1065_s29, %s1494_s27 }
 0x16f   : > { %p1067_p12 = pnand %p1066_p1, %p1407_p10 }
 0x170   : > { %p1072_p3 = por %p1071_p6, %p1070_p13 }
 0x171   : > { %p1068_p11 = pneg %p1067_p12 }
 0x172   : > { %p1074_p7 = por %p1073_p5, %p1072_p3 }
 0x174   : > { %p1075_p9 = pnand %p1074_p7, %p1068_p11 }
 0x176   : > { %1078 = shalt.err (!%p1075_p9)
}
 0x177   : > { %839 = dma.vmem_to_hbm [thread:$0]  (%p1407_p10), %s1496_s13, 64, %s1494_s27, %s1513_s15  }
 0x178   : > { %s533_s18 = scalar_lea.sflag [#allocation4], %s1462_s21  ;;  %s1079_s20 = scalar_lea.vmem %s1504_s12, 64 }
 0x179   : > { %p1080_p0 = scmp.ne.s32.totalorder %s1504_s12, %s1079_s20  ;;  %s1212_s19 = smov [#allocation10]  }
 0x17a   : > { %s1083_s29 = sshll.u32 %s1212_s19, 4  ;;  %s1084_s29 = int_to_ptr.vmem [resolvable:$false] %s1083_s29 }
 0x17b   : > { %p1081_p2 = pnand %p1080_p0, %p1407_p10  ;;  %s1085_s8 = scalar_lea.vmem %s1084_s29, 128 }
 0x17c   : > { %p1086_p8 = scmp.lt.s32.totalorder %s1504_s12, %s1084_s29  ;;  %p1087_p1 = scmp.lt.s32.totalorder %s1085_s8, %s1079_s20 }
 0x17d   : > { %p1082_p4 = pneg %p1081_p2 }
 0x17e   : > { %p1088_p12 = por %p1087_p1, %p1086_p8 }
 0x180   : > { %p1089_p11 = pnand %p1088_p12, %p1082_p4 }
 0x182   : > { %1092 = shalt.err (!%p1089_p11)
}
 0x183   : > { %s1093_s21 = scalar_lea.hbm %s1502_s11, 64  ;;  %s1097_s9 = scalar_lea.hbm %s1622_s4, 128 }
 0x184   : > { %p1094_p13 = scmp.ne.s32.totalorder %s1502_s11, %s1093_s21  ;;  %p1098_p5 = scmp.lt.u32.totalorder %s1502_s11, %s1622_s4 }
 0x185   : > { %p1099_p7 = scmp.lt.u32.totalorder %s1097_s9, %s1093_s21  ;;  %p1101_p0 = scmp.lt.u32.totalorder %s1093_s21, %s1502_s11 }
 0x186   : > { %p1095_p6 = pnand %p1094_p13, %p1407_p10 }
 0x187   : > { %p1100_p9 = por %p1099_p7, %p1098_p5 }
 0x188   : > { %p1096_p3 = pneg %p1095_p6 }
 0x189   : > { %p1102_p2 = por %p1101_p0, %p1100_p9 }
 0x18b   : > { %p1103_p4 = pnand %p1102_p2, %p1096_p3 }
 0x18d   : > { %1106 = shalt.err (!%p1103_p4)
}
 0x18e   : > { %838 = dma.vmem_to_hbm [thread:$0]  (%p1407_p10), %s1504_s12, 64, %s1502_s11, %s533_s18   ;;  %v519_v19 = vpop.f32.mrb[4].mxu0 }
 0x18f   : > { %v530_v20 = vpack.c.bf16 %v519_v19, %v519_v19  ;;  %v822_v21 = vpop.f32.mrb[5].mxu0  ;;  %s1563_s29 = scalar_lea.hbm %s1624_s6, %s1486_s7  ;;  %s1648_s8 = scalar_lea.vmem [#allocation13], %s1465_s17 }
 0x190   : > { %v522_v22 = vpop.f32.mrb[6].mxu0  ;;  %s1107_s21 = scalar_lea.vmem %s1566_s14, 64  ;;  %s1213_s12 = smov [#allocation13]  }
 0x191   : > { %v823_v23 = vpop.f32.mrb[7].mxu0  ;;  %531 = vst.msk [vmem:[%s1648_s8] sm:$0xf] %vm526_vm2, %v530_v20  ;;  %p1108_p8 = scmp.ne.s32.totalorder %s1566_s14, %s1107_s21  ;;  %s1111_s11 = sshll.u32 %s1213_s12, 4  ;;  %s1112_s11 = int_to_ptr.vmem [resolvable:$false] %s1111_s11 }
 0x192   : > { %s1113_s7 = scalar_lea.vmem %s1112_s11, 128  ;;  %p1114_p11 = scmp.lt.s32.totalorder %s1566_s14, %s1112_s11 }
 0x193   : > { %p1109_p1 = pnand %p1108_p8, %p1407_p10  ;;  %p1115_p13 = scmp.lt.s32.totalorder %s1113_s7, %s1107_s21 }
 0x195   : > { %p1110_p12 = pneg %p1109_p1  ;;  %p1116_p6 = por %p1115_p13, %p1114_p11 }
 0x197   : > { %p1117_p3 = pnand %p1116_p6, %p1110_p12 }
 0x199   : > { %1120 = shalt.err (!%p1117_p3)
}
 0x19a   : > { %s1121_s17 = scalar_lea.hbm %s1563_s29, 64  ;;  %s1125_s27 = scalar_lea.hbm %s1624_s6, 128 }
 0x19b   : > { %p1122_p5 = scmp.ne.s32.totalorder %s1563_s29, %s1121_s17  ;;  %p1126_p0 = scmp.lt.u32.totalorder %s1563_s29, %s1624_s6 }
 0x19c   : > { %p1127_p2 = scmp.lt.u32.totalorder %s1125_s27, %s1121_s17  ;;  %p1129_p8 = scmp.lt.u32.totalorder %s1121_s17, %s1563_s29 }
 0x19d   : > { %p1123_p7 = pnand %p1122_p5, %p1407_p10 }
 0x19e   : > { %p1128_p4 = por %p1127_p2, %p1126_p0 }
 0x19f   : > { %p1124_p9 = pneg %p1123_p7 }
 0x1a0   : > { %p1130_p1 = por %p1129_p8, %p1128_p4 }
 0x1a2   : > { %p1131_p12 = pnand %p1130_p1, %p1124_p9 }
 0x1a4   : > { %1134 = shalt.err (!%p1131_p12)
}
 0x1a5   : > { %840 = dma.vmem_to_hbm [thread:$0]  (%p1407_p10), %s1566_s14, 64, %s1563_s29, %s1513_s15  }
 0x1a6 PF: > { %s1649_s24 = sld [smem:[#allocation19_spill]]  ;;  %s1650_s20 = sld [smem:[#allocation20_spill]] }
 0x1a7   : > { %p1652_p13 = scmp.ge.s32.totalorder %s1201_s26, 2 }
 0x1ac   : > { %s597_s19 = sand.u32 1, %s1649_s24   ;;  %p1651_p11 = scmp.ne.s32.totalorder %s1650_s20, 0 }
 0x1ad   : > { %s598_s8 = scalar_lea.sflag [#allocation4], %s597_s19 }
 0x1ae   : > { %p859_p6 = pnand %p1652_p13, %p1651_p11 }
 0x1b0   : > { %1172 = dma.done.wait (!%p859_p6), %s598_s8, 64  }
 0x1b1   : > { %1174 = vsyncadd (!%p859_p6), %s598_s8, 4294967232  ;;  %s1653_s21 = sadd.s32 4294967294, %s1201_s26  }
 0x1b2   : > { %s606_s12 = sand.u32 1, %s1653_s21  }
 0x1b3   : > { %s607_s11 = scalar_lea.sflag [#allocation12], %s606_s12 }
 0x1b4   : > { %1176 = dma.done.wait (!%p859_p6), %s607_s11, 128  }
 0x1b5   : > { %1178 = vsyncadd (!%p859_p6), %s607_s11, 4294967168  ;;  %s28_s26 = sadd.s32 1, %s1201_s26   ;;  %s1654_s21 = smov %s1185_s22 }
 0x1b6   : > { %p25_p10 = scmp.ge.s32.totalorder %s28_s26, 4   ;;  %s1655_s22 = smov %s1189_s23 }
 0x1b7   : > { %s1656_s23 = smov %s1419_s16  ;;  %s1657_s24 = smov %s1197_s25 }
 0x1b8   : > { %s1658_s25 = smov %s1660_s10  ;;  %27 = sbr.rel (!%p25_p10) target bundleno = 10 (0xa), region = 125 }
 0x1bf   :  { %621 = vsyncpa [#allocation3], 1 }
 0x1c0   :  { %623 = vsyncpa [#allocation3 + $0x1], 1 }
 0x1c1   :  { %624 = vsyncpa [#allocation6], 1 }
 0x1c2   :  { %625 = vsyncpa [#allocation9], 1 }
 0x1c3   :  { %626 = vsyncpa [#allocation4], 1 }
 0x1c4   :  { %628 = vsyncpa [#allocation4 + $0x1], 1 }
 0x1c5   :  { %629 = vsyncpa [#allocation12], 1 }
 0x1c6   :  { %631 = vsyncpa [#allocation12 + $0x1], 1 }

</bundles_post_ra>
